<compile_context>
chip_gen: v5e
topology: v5e:2x2
jax: 0.10.0
libtpu: 0.0.40
codegen_flags: <defaults>
</compile_context>

<pallas_src>
import jax
import jax.numpy as jnp
from jax import lax
from jax.experimental import pallas as pl
from jax.experimental.pallas import tpu as pltpu


def _frozen_bn_kernel(x_ref, scale_ref, bias_ref, o_ref):
    # x_ref/o_ref: (R, Cb) tile; scale_ref/bias_ref: (R, 1) f32 -> row broadcast.
    x = x_ref[...].astype(jnp.float32)
    y = x * scale_ref[...] + bias_ref[...]
    o_ref[...] = y.astype(o_ref.dtype)


def frozen_batchnorm2d(x, weight, bias, running_mean, running_var,
                       *, eps=1e-5, target_block_bytes=2 * 1024 * 1024):
    """y = x * (w * rsqrt(rv + eps)) + (b - rm * w * rsqrt(rv + eps)), per channel."""
    N, C, H, W = x.shape
    rows, cols = N * C, H * W
    itemsize = jnp.dtype(x.dtype).itemsize

    # ---- Per-channel affine, computed once in f32 (matches PyTorch semantics).
    w32 = weight.astype(jnp.float32)
    b32 = bias.astype(jnp.float32)
    rm32 = running_mean.astype(jnp.float32)
    rv32 = running_var.astype(jnp.float32)
    scale_c = w32 * lax.rsqrt(rv32 + jnp.float32(eps))            # (C,)
    bias_c = b32 - rm32 * scale_c                                  # (C,)

    # One value per (n, c) row of the flattened (N*C, H*W) view.
    scale_rows = jnp.broadcast_to(scale_c[None, :], (N, C)).reshape(rows, 1)
    bias_rows = jnp.broadcast_to(bias_c[None, :], (N, C)).reshape(rows, 1)

    x2 = x.reshape(rows, cols)                                     # lane-dense view

    # ---- Column block: keep full H*W (lane-dense) unless even an 8-row slab
    # would exceed the per-block budget; then chop into 128-lane-aligned chunks.
    if 8 * cols * itemsize <= target_block_bytes:
        block_cols = cols
    else:
        block_cols = max(128, ((target_block_bytes // (8 * itemsize)) // 128) * 128)
        block_cols = min(block_cols, cols)

    # ---- Row block: multiple of 8 rows sized so one block is ~target_block_bytes.
    rows_fit = max(1, target_block_bytes // (block_cols * itemsize))
    block_rows = max(8, (rows_fit // 8) * 8)
    block_rows = rows if rows <= block_rows else block_rows

    grid = (pl.cdiv(rows, block_rows), pl.cdiv(cols, block_cols))

    x_spec = pl.BlockSpec((block_rows, block_cols), lambda i, j: (i, j))
    sb_spec = pl.BlockSpec((block_rows, 1), lambda i, j: (i, 0))
    out_spec = pl.BlockSpec((block_rows, block_cols), lambda i, j: (i, j))

    out2 = pl.pallas_call(
        _frozen_bn_kernel,
        out_shape=jax.ShapeDtypeStruct((rows, cols), x.dtype),
        grid=grid,
        in_specs=[x_spec, sb_spec, sb_spec],
        out_specs=out_spec,
        compiler_params=pltpu.CompilerParams(
            dimension_semantics=("parallel", "parallel"),
            vmem_limit_bytes=32 * 1024 * 1024,
        ),
    )(x2, scale_rows, bias_rows)

    return out2.reshape(N, C, H, W)


def frozen_batchnorm2d_ref(x, weight, bias, running_mean, running_var):
    w = weight.reshape(1, -1, 1, 1)
    b = bias.reshape(1, -1, 1, 1)
    rv = running_var.reshape(1, -1, 1, 1)
    rm = running_mean.reshape(1, -1, 1, 1)
    eps = 1e-5
    scale = w * lax.rsqrt(rv + eps)
    return x * scale + (b - rm * scale)


if __name__ == "__main__":
    N, C, H, W = 2, 4, 16, 16

    key = jax.random.PRNGKey(0)
    kx, kw, kb, km, kv = jax.random.split(key, 5)

    x = jax.random.normal(kx, (N, C, H, W), dtype=jnp.float32)

    # Module __init__ buffers: weight=ones, bias=zeros, running_mean=zeros,
    # running_var=ones (shape (C,)). Perturb deterministically so the affine
    # transform is non-trivial (simulating frozen pretrained stats).
    weight = jnp.ones((C,), jnp.float32) + 0.1 * jax.random.normal(kw, (C,), jnp.float32)
    bias = jnp.zeros((C,), jnp.float32) + 0.1 * jax.random.normal(kb, (C,), jnp.float32)
    running_mean = jnp.zeros((C,), jnp.float32) + 0.1 * jax.random.normal(km, (C,), jnp.float32)
    running_var = jnp.ones((C,), jnp.float32) + 0.1 * jnp.abs(jax.random.normal(kv, (C,), jnp.float32))

    out = frozen_batchnorm2d(x, weight, bias, running_mean, running_var)
    out = jax.block_until_ready(out)

    ref = frozen_batchnorm2d_ref(x, weight, bias, running_mean, running_var)
    assert out.shape == (N, C, H, W)
    assert out.dtype == jnp.float32
    assert jnp.allclose(out, ref, atol=1e-5, rtol=1e-5), "mismatch vs reference"

    print("KERNEL_OK")
</pallas_src>

<mosaic_0001>
module attributes {stable_mosaic.version = 11 : i64} {
  func.func @_frozen_bn_kernel(%arg0: i32, %arg1: i32, %arg2: memref<8x256xf32, #tpu.memory_space<vmem>>, %arg3: memref<8x1xf32, #tpu.memory_space<vmem>>, %arg4: memref<8x1xf32, #tpu.memory_space<vmem>>, %arg5: memref<8x256xf32, #tpu.memory_space<vmem>>) attributes {dimension_semantics = [#tpu.dimension_semantics<parallel>, #tpu.dimension_semantics<parallel>], iteration_bounds = array<i64: 1, 1>, scalar_prefetch = 0 : i64, scratch_operands = 0 : i64, tpu.core_type = #tpu.core_type<tc>, window_params = [{transform_indices = @transform_0, window_bounds = array<i64: 8, 256>}, {transform_indices = @transform_1, window_bounds = array<i64: 8, 1>}, {transform_indices = @transform_2, window_bounds = array<i64: 8, 1>}, {transform_indices = @transform_3, window_bounds = array<i64: 8, 256>}]} {
    %c0 = arith.constant 0 : index
    %c0_0 = arith.constant 0 : index
    %0 = vector.load %arg2[%c0, %c0_0] : memref<8x256xf32, #tpu.memory_space<vmem>>, vector<8x256xf32>
    %c0_1 = arith.constant 0 : index
    %c0_2 = arith.constant 0 : index
    %1 = vector.load %arg3[%c0_1, %c0_2] : memref<8x1xf32, #tpu.memory_space<vmem>>, vector<8x1xf32>
    %2 = vector.broadcast %1 : vector<8x1xf32> to vector<8x256xf32>
    %3 = arith.mulf %0, %2 : vector<8x256xf32>
    %c0_3 = arith.constant 0 : index
    %c0_4 = arith.constant 0 : index
    %4 = vector.load %arg4[%c0_3, %c0_4] : memref<8x1xf32, #tpu.memory_space<vmem>>, vector<8x1xf32>
    %5 = vector.broadcast %4 : vector<8x1xf32> to vector<8x256xf32>
    %6 = arith.addf %3, %5 : vector<8x256xf32>
    %c0_5 = arith.constant 0 : index
    %c0_6 = arith.constant 0 : index
    %7 = vector.load %arg5[%c0_5, %c0_6] : memref<8x256xf32, #tpu.memory_space<vmem>>, vector<8x256xf32>
    tpu.vector_store %arg5[%c0_5, %c0_6], %6 {strides = array<i32>} : memref<8x256xf32, #tpu.memory_space<vmem>>, vector<8x256xf32>,
    return
  }
  func.func @transform_0(%arg0: i32, %arg1: i32) -> (i32, i32) {
    %c0_i32 = arith.constant 0 : i32
    return %arg0, %arg1 : i32, i32
  }
  func.func @transform_1(%arg0: i32, %arg1: i32) -> (i32, i32) {
    %c0_i32 = arith.constant 0 : i32
    %c0_i32_0 = arith.constant 0 : i32
    return %arg0, %c0_i32 : i32, i32
  }
  func.func @transform_2(%arg0: i32, %arg1: i32) -> (i32, i32) {
    %c0_i32 = arith.constant 0 : i32
    %c0_i32_0 = arith.constant 0 : i32
    return %arg0, %c0_i32 : i32, i32
  }
  func.func @transform_3(%arg0: i32, %arg1: i32) -> (i32, i32) {
    %c0_i32 = arith.constant 0 : i32
    return %arg0, %arg1 : i32, i32
  }
}

</mosaic_0001>

<bundles_post_ra>
// kernel: tpu_custom_call.1
= control target key start
LH: loop header
LB: loop body
LE: loop exit
PB: predicated region body
PF: predicated region fallthrough
CT: control target
= control target key end

     0   :  { %s117_s0 = inlined_call_operand.vmem [shape: f32[8,256], index: 0, kind: input, shape index: {}]   ;;  %s118_s1 = inlined_call_operand.vmem [shape: f32[8,1], index: 1, kind: input, shape index: {}]   ;;  %s119_s2 = inlined_call_operand.vmem [shape: f32[8,1], index: 2, kind: input, shape index: {}]   ;;  %s120_s3 = inlined_call_operand.hbm [shape: f32[8,256], index: 3, kind: output, shape index: {}]  }
   0x1   :  { %v17_v0 = vld [vmem:[%s118_s1] sm:$0xff] }
   0x2   :  { %8 = vsyncpa [#allocation3], 0  ;;  %v80_v1 = vmov 0   ;;  %v25_v2 = vld [vmem:[%s119_s2] sm:$0xff]  ;;  %v16_v5 = vld [vmem:[%s117_s0 + $0x8] sm:$0xff]  ;;  %s81_s1 = smov [#allocation2]  }
   0x3   :  { %53 = vset.pattern.permute.xlu0 %v80_v1  ;;  %v15_v4 = vld [vmem:[%s117_s0] sm:$0xff]  ;;  %s40_s20 = sshll.u32 %s81_s1, 4  ;;  %s42_s23 = sshll.u32 %s120_s3, 4  ;;  %s41_s20 = int_to_ptr.vmem [resolvable:$true] %s40_s20  ;;  %s43_s23 = int_to_ptr.hbm [resolvable:$true] %s42_s23 }
   0x4   :  { %20 = vperm.xlu0 %53, %v17_v0  }
   0xc   :  { %28 = vperm.xlu0 %53, %v25_v2  }
  0x76   :  { %v21_v3 = vpop.permute.xlu0 %20 }
  0x77   :  { %v23_v6 = vmul.f32 %v21_v3, %v15_v4  ;;  %v24_v7 = vmul.f32 %v21_v3, %v16_v5 }
  0x7e   :  { %v29_v8 = vpop.permute.xlu0 %28 }
  0x7f   :  { %v31_v9 = vadd.f32 %v29_v8, %v23_v6  ;;  %v32_v10 = vadd.f32 %v29_v8, %v24_v7 }
  0x81   :  { %33 = vst [vmem:[#allocation2] sm:$0xff] %v31_v9 }
  0x82   :  { %34 = vst [vmem:[#allocation2 + $0x8] sm:$0xff] %v32_v10 }
  0x83   :  { %45 = dma.vmem_to_hbm [thread:$0]  %s41_s20, 256, %s43_s23, [#allocation3]  }
  0x84   :  { %78 = dma.done.wait [#allocation3], 256  }
  0x85   :  { %79 = vsyncadd [#allocation3], 4294967040 }
  0x86   :  { %50 = vsyncpa [#allocation3], 1 }

</bundles_post_ra>
